<compile_context>
chip_gen: v7x
topology: tpu7x:2x2x1
jax: 0.10.0
libtpu: 0.0.40
codegen_flags: <defaults>
</compile_context>

<pallas_src>
import jax
import jax.numpy as jnp
from jax.experimental import pallas as pl
from jax.experimental.pallas import tpu as pltpu


def _mlp_kernel(obs_ref, w1_ref, b1_ref, w2_ref, b2_ref, mean_ref):
    # Layer 1 on the MXU: (bm, K) @ (K, H), f32 accumulate.  Activations are
    # cast to the weight dtype only at the MXU boundary.
    x = obs_ref[...].astype(w1_ref.dtype)
    h = jnp.dot(x, w1_ref[...], preferred_element_type=jnp.float32)
    # Bias + ReLU stay in f32 on the VPU (v5e has no bf16 VPU path).
    h = jnp.maximum(h + b1_ref[...], 0.0)
    # Layer 2: (bm, H) @ (H, N) on the MXU, f32 accumulate, lane-dense store.
    mean = jnp.dot(h.astype(w2_ref.dtype), w2_ref[...],
                   preferred_element_type=jnp.float32)
    mean_ref[...] = (mean + b2_ref[...]).astype(mean_ref.dtype)


def _choose_fold(obs_dim, hidden, act_dim, batch):
    """Fold factor F (power of 2): batch rows folded into the contraction dim
    via block-diagonal weights, targeting K = F*obs_dim ~ 256 (MXU depth)."""
    F = 1
    while (2 * F * obs_dim <= 256          # contraction depth target
           and 2 * F * act_dim <= 512      # keep output lane width modest
           and 2 * F * hidden <= 2048      # folded weights stay tiny in VMEM
           and batch >= 2 * F):
        F *= 2
    return F


def _padded_block_bytes(shape, dtype):
    """VMEM footprint of one block incl. (sublane, 128-lane) tile padding."""
    itemsize = jnp.dtype(dtype).itemsize
    sub = 8 * max(1, 4 // itemsize)        # 8 rows for f32, 16 for bf16
    if len(shape) == 1:
        s, l = 1, shape[0]
        lead = 1
    else:
        s, l = shape[-2], shape[-1]
        lead = 1
        for d in shape[:-2]:
            lead *= d
    return lead * (-(-s // sub) * sub) * (-(-l // 128) * 128) * itemsize


def net_continuous_actions_forward(obs, w1, b1, w2, b2, log_std, *,
                                   block_batch=8192,
                                   small_batch_fast_path=True):
    """Forward pass. obs: (B, ...) flattened to (B, obs_dim). Returns (mean, std)."""
    batch = obs.shape[0]
    obs2d = obs.reshape(batch, -1)          # .view(B, -1); streamed in native dtype
    obs_dim = obs2d.shape[1]
    hidden = w1.shape[1]
    act_dim = w2.shape[1]

    # std depends only on the (act_dim,) parameter -> plain jnp in the wrapper.
    std = jnp.exp(jnp.clip(log_std.astype(jnp.float32), -20.0, 2.0))

    # Tiny batches: pallas_call launch/grid setup dominates a ~kFLOP/row MLP.
    if small_batch_fast_path and batch <= 128:
        o32 = obs2d.astype(jnp.float32)
        h = jnp.maximum(o32 @ w1.astype(jnp.float32) + b1.astype(jnp.float32), 0.0)
        mean = h @ w2.astype(jnp.float32) + b2.astype(jnp.float32)
        return mean, std

    # ---- Fold batch rows into the contraction dim (block-diagonal weights) ----
    F = _choose_fold(obs_dim, hidden, act_dim, batch)
    kd, hd, nd = F * obs_dim, F * hidden, F * act_dim
    if F > 1:
        w1k = jnp.kron(jnp.eye(F, dtype=w1.dtype), w1)        # (F*obs, F*hid)
        w2k = jnp.kron(jnp.eye(F, dtype=w2.dtype), w2)        # (F*hid, F*act)
        b1k = jnp.tile(b1.astype(jnp.float32), F).reshape(1, hd)
        b2k = jnp.tile(b2.astype(jnp.float32), F).reshape(1, nd)
    else:
        w1k, w2k = w1, w2
        b1k = b1.astype(jnp.float32).reshape(1, hd)
        b2k = b2.astype(jnp.float32).reshape(1, nd)

    folded_B = pl.cdiv(batch, F)

    # ---- Batch-tile selection: big tiles amortize the ~0.35us per-step cost;
    #      an even step count lets v7x's two TensorCores split the batch. ----
    bm_target = max(block_batch // F, 8)
    if folded_B < 16:
        n_steps = 1
        bm_f = folded_B                     # full-extent block (no (8,128) issue)
    else:
        n_steps = max(2, pl.cdiv(folded_B, bm_target))
        if n_steps % 2:
            n_steps += 1                    # even grid -> balanced megacore split
        bm_f = pl.cdiv(pl.cdiv(folded_B, n_steps), 8) * 8   # sublane-aligned
    padded_folded = n_steps * bm_f
    padded = padded_folded * F
    if padded != batch:
        obs2d = jnp.pad(obs2d, ((0, padded - batch), (0, 0)))
    obs_folded = obs2d.reshape(padded_folded, kd)            # free row-major reshape

    # ---- VMEM budget with (8,128) tile padding: double-buffered streamed
    #      blocks + resident weights/biases, with margin. ----
    vmem_need = (2 * _padded_block_bytes((bm_f, kd), obs_folded.dtype)
                 + 2 * _padded_block_bytes((bm_f, nd), jnp.float32)
                 + _padded_block_bytes((kd, hd), w1k.dtype)
                 + _padded_block_bytes((hd, nd), w2k.dtype)
                 + _padded_block_bytes((1, hd), jnp.float32)
                 + _padded_block_bytes((1, nd), jnp.float32))
    vmem_limit = int(min(max(int(vmem_need * 1.5) + (2 << 20), 4 << 20), 48 << 20))

    cost = pl.CostEstimate(
        flops=2 * padded * (obs_dim * hidden + hidden * act_dim),
        transcendentals=0,
        bytes_accessed=int(obs_folded.size * jnp.dtype(obs_folded.dtype).itemsize
                           + padded * act_dim * 4
                           + w1k.size * jnp.dtype(w1k.dtype).itemsize
                           + w2k.size * jnp.dtype(w2k.dtype).itemsize
                           + (hd + nd) * 4))

    mean_folded = pl.pallas_call(
        _mlp_kernel,
        out_shape=jax.ShapeDtypeStruct((padded_folded, nd), jnp.float32),
        grid_spec=pltpu.PrefetchScalarGridSpec(
            num_scalar_prefetch=0,
            grid=(n_steps,),
            in_specs=[
                pl.BlockSpec((bm_f, kd), lambda i: (i, 0)),   # streamed batch tile
                pl.BlockSpec((kd, hd), lambda i: (0, 0)),     # resident block-diag W1
                pl.BlockSpec((1, hd), lambda i: (0, 0)),
                pl.BlockSpec((hd, nd), lambda i: (0, 0)),     # resident block-diag W2
                pl.BlockSpec((1, nd), lambda i: (0, 0)),
            ],
            out_specs=pl.BlockSpec((bm_f, nd), lambda i: (i, 0)),
        ),
        compiler_params=pltpu.CompilerParams(
            dimension_semantics=("parallel",),   # megacore split on v7x
            vmem_limit_bytes=vmem_limit,
        ),
        cost_estimate=cost,
    )(obs_folded, w1k, b1k, w2k, b2k)

    # Unfold back to (B, act_dim); padded rows are garbage and sliced off.
    mean = mean_folded.reshape(padded, act_dim)[:batch]
    return mean, std


def init_params(key, obs_dim, hidden_size, act_dim, dtype=jnp.float32):
    """nn.Linear-style init (uniform +/- 1/sqrt(fan_in)); weights stored (in, out)."""
    k1, k2, k3, k4 = jax.random.split(key, 4)
    bound1 = 1.0 / jnp.sqrt(obs_dim)
    bound2 = 1.0 / jnp.sqrt(hidden_size)
    w1 = jax.random.uniform(k1, (obs_dim, hidden_size), jnp.float32, -bound1, bound1).astype(dtype)
    b1 = jax.random.uniform(k2, (hidden_size,), jnp.float32, -bound1, bound1)
    w2 = jax.random.uniform(k3, (hidden_size, act_dim), jnp.float32, -bound2, bound2).astype(dtype)
    b2 = jax.random.uniform(k4, (act_dim,), jnp.float32, -bound2, bound2)
    log_std = jnp.zeros((act_dim,), jnp.float32)  # nn.Parameter(torch.zeros(act_dim))
    return w1, b1, w2, b2, log_std


if __name__ == "__main__":
    key = jax.random.PRNGKey(0)
    k_obs, k_par, k_mid, k_big = jax.random.split(key, 4)

    obs_dim, hidden_size, act_dim = 16, 32, 8
    w1, b1, w2, b2, log_std = init_params(k_par, obs_dim, hidden_size, act_dim)

    def ref_forward(o):
        o2 = o.reshape(o.shape[0], -1).astype(jnp.float32)
        h = jnp.maximum(o2 @ w1.astype(jnp.float32) + b1, 0.0)
        return h @ w2.astype(jnp.float32) + b2, jnp.exp(jnp.clip(log_std, -20.0, 2.0))

    # Small case: non-flat obs exercises .view(B, -1); Pallas path forced so the
    # kernel runs at tiny shapes (single-step grid, small fold factor).
    obs_small = jax.random.normal(k_obs, (2, 4, 4), jnp.float32)
    mean, std = net_continuous_actions_forward(
        obs_small, w1, b1, w2, b2, log_std, small_batch_fast_path=False)
    jax.block_until_ready((mean, std))
    mean_ref, std_ref = ref_forward(obs_small)
    assert mean.shape == (2, act_dim) and std.shape == (act_dim,)
    assert jnp.allclose(mean, mean_ref, atol=1e-5), "mean mismatch (small)"
    assert jnp.allclose(std, std_ref, atol=1e-6), "std mismatch"

    # Medium, non-aligned batch: block-diagonal fold (F=16), even 2-step grid,
    # batch padding, lane-dense (128-wide) output stores.
    obs_mid = jax.random.normal(k_mid, (1037, obs_dim), jnp.float32)
    mean_m, std_m = net_continuous_actions_forward(obs_mid, w1, b1, w2, b2, log_std)
    jax.block_until_ready((mean_m, std_m))
    mean_m_ref, _ = ref_forward(obs_mid)
    assert mean_m.shape == (1037, act_dim)
    assert jnp.allclose(mean_m, mean_m_ref, atol=1e-4), "mean mismatch (medium)"
    assert jnp.allclose(std_m, std_ref, atol=1e-6), "std mismatch (medium)"

    # Larger batch with a smaller block_batch: exercises the multi-step (>2,
    # even) grid and the padded-VMEM accounting path.
    obs_big = jax.random.normal(k_big, (5000, obs_dim), jnp.float32)
    mean_b, _ = net_continuous_actions_forward(
        obs_big, w1, b1, w2, b2, log_std, block_batch=1024)
    jax.block_until_ready(mean_b)
    mean_b_ref, _ = ref_forward(obs_big)
    assert mean_b.shape == (5000, act_dim)
    assert jnp.allclose(mean_b, mean_b_ref, atol=1e-4), "mean mismatch (large)"

    # Fast-path sanity check (tiny batch skips pallas_call by default).
    obs_fast = obs_big[:32]
    mean_f, _ = net_continuous_actions_forward(obs_fast, w1, b1, w2, b2, log_std)
    jax.block_until_ready(mean_f)
    assert jnp.allclose(mean_f, mean_b_ref[:32], atol=1e-4), "mean mismatch (fast path)"

    print("KERNEL_OK")
</pallas_src>

<mosaic_0001>
module attributes {stable_mosaic.version = 11 : i64} {
  func.func @_mlp_kernel(%arg0: i32, %arg1: memref<1x32xf32, #tpu.memory_space<vmem>>, %arg2: memref<32x64xf32, #tpu.memory_space<vmem>>, %arg3: memref<1x64xf32, #tpu.memory_space<vmem>>, %arg4: memref<64x16xf32, #tpu.memory_space<vmem>>, %arg5: memref<1x16xf32, #tpu.memory_space<vmem>>, %arg6: memref<1x16xf32, #tpu.memory_space<vmem>>) attributes {dimension_semantics = [#tpu.dimension_semantics<parallel>], iteration_bounds = array<i64: 1>, scalar_prefetch = 0 : i64, scratch_operands = 0 : i64, tpu.core_type = #tpu.core_type<tc>, window_params = [{transform_indices = @transform_0, window_bounds = array<i64: 1, 32>}, {pipeline_mode = #tpu.pipeline_mode<synchronous>, transform_indices = @transform_1, window_bounds = array<i64: 32, 64>}, {pipeline_mode = #tpu.pipeline_mode<synchronous>, transform_indices = @transform_2, window_bounds = array<i64: 1, 64>}, {pipeline_mode = #tpu.pipeline_mode<synchronous>, transform_indices = @transform_3, window_bounds = array<i64: 64, 16>}, {pipeline_mode = #tpu.pipeline_mode<synchronous>, transform_indices = @transform_4, window_bounds = array<i64: 1, 16>}, {transform_indices = @transform_5, window_bounds = array<i64: 1, 16>}]} {
    %c0 = arith.constant 0 : index
    %c0_0 = arith.constant 0 : index
    %0 = vector.load %arg1[%c0, %c0_0] : memref<1x32xf32, #tpu.memory_space<vmem>>, vector<1x32xf32>
    %c0_1 = arith.constant 0 : index
    %c0_2 = arith.constant 0 : index
    %1 = vector.load %arg2[%c0_1, %c0_2] : memref<32x64xf32, #tpu.memory_space<vmem>>, vector<32x64xf32>
    %cst = arith.constant dense<0.000000e+00> : vector<1x64xf32>
    %2 = tpu.matmul %0, %1, %cst {dimension_numbers = #tpu.dot_dimension_numbers<[1], [0], [0], [1], [0, 0, 1, 1], [], []>} : vector<1x32xf32>, vector<32x64xf32>, vector<1x64xf32> -> vector<1x64xf32>
    %c0_3 = arith.constant 0 : index
    %c0_4 = arith.constant 0 : index
    %3 = vector.load %arg3[%c0_3, %c0_4] : memref<1x64xf32, #tpu.memory_space<vmem>>, vector<1x64xf32>
    %4 = arith.addf %2, %3 : vector<1x64xf32>
    %cst_5 = arith.constant 0.000000e+00 : f32
    %5 = vector.broadcast %cst_5 : f32 to vector<1x64xf32>
    %6 = arith.maximumf %4, %5 : vector<1x64xf32>
    %c0_6 = arith.constant 0 : index
    %c0_7 = arith.constant 0 : index
    %7 = vector.load %arg4[%c0_6, %c0_7] : memref<64x16xf32, #tpu.memory_space<vmem>>, vector<64x16xf32>
    %cst_8 = arith.constant dense<0.000000e+00> : vector<1x16xf32>
    %8 = tpu.matmul %6, %7, %cst_8 {dimension_numbers = #tpu.dot_dimension_numbers<[1], [0], [0], [1], [0, 0, 1, 1], [], []>} : vector<1x64xf32>, vector<64x16xf32>, vector<1x16xf32> -> vector<1x16xf32>
    %c0_9 = arith.constant 0 : index
    %c0_10 = arith.constant 0 : index
    %9 = vector.load %arg5[%c0_9, %c0_10] : memref<1x16xf32, #tpu.memory_space<vmem>>, vector<1x16xf32>
    %10 = arith.addf %8, %9 : vector<1x16xf32>
    %c0_11 = arith.constant 0 : index
    %c0_12 = arith.constant 0 : index
    %11 = vector.load %arg6[%c0_11, %c0_12] : memref<1x16xf32, #tpu.memory_space<vmem>>, vector<1x16xf32>
    tpu.vector_store %arg6[%c0_11, %c0_12], %10 {strides = array<i32>} : memref<1x16xf32, #tpu.memory_space<vmem>>, vector<1x16xf32>,
    return
  }
  func.func @transform_0(%arg0: i32) -> (i32, i32) {
    %c0_i32 = arith.constant 0 : i32
    %c0_i32_0 = arith.constant 0 : i32
    return %arg0, %c0_i32 : i32, i32
  }
  func.func @transform_1(%arg0: i32) -> (i32, i32) {
    %c0_i32 = arith.constant 0 : i32
    %c0_i32_0 = arith.constant 0 : i32
    %c0_i32_1 = arith.constant 0 : i32
    return %c0_i32, %c0_i32_0 : i32, i32
  }
  func.func @transform_2(%arg0: i32) -> (i32, i32) {
    %c0_i32 = arith.constant 0 : i32
    %c0_i32_0 = arith.constant 0 : i32
    %c0_i32_1 = arith.constant 0 : i32
    return %c0_i32, %c0_i32_0 : i32, i32
  }
  func.func @transform_3(%arg0: i32) -> (i32, i32) {
    %c0_i32 = arith.constant 0 : i32
    %c0_i32_0 = arith.constant 0 : i32
    %c0_i32_1 = arith.constant 0 : i32
    return %c0_i32, %c0_i32_0 : i32, i32
  }
  func.func @transform_4(%arg0: i32) -> (i32, i32) {
    %c0_i32 = arith.constant 0 : i32
    %c0_i32_0 = arith.constant 0 : i32
    %c0_i32_1 = arith.constant 0 : i32
    return %c0_i32, %c0_i32_0 : i32, i32
  }
  func.func @transform_5(%arg0: i32) -> (i32, i32) {
    %c0_i32 = arith.constant 0 : i32
    %c0_i32_0 = arith.constant 0 : i32
    return %arg0, %c0_i32 : i32, i32
  }
}

</mosaic_0001>

<bundles_post_ra>
// kernel: tpu_custom_call.1
= control target key start
LH: loop header
LB: loop body
LE: loop exit
PB: predicated region body
PF: predicated region fallthrough
CT: control target
= control target key end

     0   :  { %v293_v3 = vmov 0.0|0.0   ;;  %vm294_vm0 = vmmov 0   ;;  %v295_v6 = vmov 0.0   ;;  %s384_s0 = inlined_call_operand.vmem [shape: f32[1,32], index: 0, kind: input, shape index: {}]   ;;  %s385_s1 = inlined_call_operand.vmem [shape: f32[32,64], index: 1, kind: input, shape index: {}]   ;;  %s386_s2 = inlined_call_operand.vmem [shape: f32[1,64], index: 2, kind: input, shape index: {}]   ;;  %s387_s3 = inlined_call_operand.vmem [shape: f32[64,16], index: 3, kind: input, shape index: {}]   ;;  %s388_s4 = inlined_call_operand.vmem [shape: f32[1,16], index: 4, kind: input, shape index: {}]   ;;  %s389_s5 = inlined_call_operand.hbm [shape: f32[1,16], index: 5, kind: output, shape index: {}]  }
   0x1   :  { %v22_v0 = vld [vmem:[%s385_s1] sm:$0xff]  ;;  %v23_v1 = vld [vmem:[%s385_s1 + $0x8] sm:$0xff]  ;;  %v24_v2 = vld [vmem:[%s385_s1 + $0x10] sm:$0xff]  ;;  %247 = vmatprep.subr.bf16.mxu0 %v293_v3  ;;  %225 = vmatprep.mubr.msk.f32.mxu0 %vm294_vm0, %v295_v6 }
   0x2   :  { %v248_v4 = vpack.c.bf16 %v23_v1, %v22_v0  ;;  %v25_v5 = vld [vmem:[%s385_s1 + $0x18] sm:$0xff]  ;;  %v102_v7 = vld [vmem:[%s387_s3] sm:$0xff]  ;;  %253 = vmatprep.subr.bf16.mxu1 %v293_v3  ;;  %v103_v8 = vld [vmem:[%s387_s3 + $0x8] sm:$0xff]  ;;  %244 = vmatprep.mubr.msk.f32.mxu1 %vm294_vm0, %v295_v6 }
   0x3   :  { %v104_v9 = vld [vmem:[%s387_s3 + $0x10] sm:$0xff]  ;;  %v105_v10 = vld [vmem:[%s387_s3 + $0x18] sm:$0xff]  ;;  %v251_v11 = vpack.c.bf16 %v25_v5, %v24_v2  ;;  %v254_v12 = vpack.c.bf16 %v103_v8, %v102_v7 }
   0x4   :  { %249 = vmatpush3.bf16.msra.mxu0 %v248_v4 }
   0x5   :  { %250 = vmatprep.subr.bf16.mxu0 %v293_v3 }
   0x6   :  { %10 = vsyncpa [#allocation3], 0  ;;  %255 = vmatpush3.bf16.msra.mxu1 %v254_v12  ;;  %v257_v13 = vpack.c.bf16 %v105_v10, %v104_v9  ;;  %v106_v14 = vld [vmem:[%s387_s3 + $0x20] sm:$0xff]  ;;  %v107_v15 = vld [vmem:[%s387_s3 + $0x28] sm:$0xff]  ;;  %vm27_vm1 = vcmask 261120   ;;  %vm111_vm2 = vcmask 523264  }
   0x7   :  { %256 = vmatprep.subr.bf16.mxu1 %v293_v3  ;;  %v21_v16 = vld [vmem:[%s384_s0] sm:$0x1]  ;;  %v260_v17 = vpack.c.bf16 %v107_v15, %v106_v14  ;;  %v108_v18 = vld [vmem:[%s387_s3 + $0x30] sm:$0xff]  ;;  %v109_v19 = vld [vmem:[%s387_s3 + $0x38] sm:$0xff]  ;;  %s296_s21 = smov [#allocation2]   ;;  %vm185_vm3 = vcmask 122880  }
   0x8   :  { %252 = vmatpush3.bf16.msra.mxu0 %v251_v11  ;;  %v263_v20 = vpack.c.bf16 %v109_v19, %v108_v18  ;;  %v26_v21 = vld [vmem:[%s386_s2] sm:$0x1]  ;;  %s193_s22 = sshll.u32 %s296_s21, 4  ;;  %s194_s22 = int_to_ptr.vmem [resolvable:$true] %s193_s22 }
   0x9   :  { %v110_v26 = vld [vmem:[%s388_s4] sm:$0x1]  ;;  %s269_s3 = scalar_lea.vmem %s194_s22, 16  ;;  %s273_s2 = scalar_lea.vmem %s194_s22, 32 }
   0xa   :  { %258 = vmatpush3.bf16.msra.mxu1 %v257_v13  ;;  %p270_p0 = scmp.ne.s32.totalorder %s194_s22, %s269_s3  ;;  %p274_p1 = scmp.lt.s32.totalorder %s194_s22, %s194_s22 }
   0xb   :  { %226 = vmatmul.mubr.msk.f32.vlgmr.msra.gmra.mrb[0].mxu0 %vm27_vm1, %v21_v16  ;;  %259 = vmatprep.subr.bf16.mxu1 %v293_v3  ;;  %p275_p2 = scmp.lt.s32.totalorder %s273_s2, %s269_s3 }
   0xd   :  { %p276_p3 = por %p275_p2, %p274_p1 }
   0xe   :  { %261 = vmatpush3.bf16.msra.mxu1 %v260_v17 }
   0xf   :  { %262 = vmatprep.subr.bf16.mxu1 %v293_v3  ;;  %p277_p4 = pnand %p276_p3, %p270_p0 }
  0x12   :  { %264 = vmatpush3.bf16.msra.mxu1 %v263_v20 }
  0xde   :  { %v97_v22 = vpop.f32.mrb[0].mxu0 }
  0xdf   :  { %v98_v23 = vadd.f32 %v97_v22, %v26_v21  ;;  %v227_v24 = vpop.f32.mrb[1].mxu0 }
  0xe1   :  { %v101_v25 = vmax.f32 %v98_v23, 0.0 }
  0xe3   :  { %245 = vmatmul.mubr.msk.f32.vlgmr.msra.gmra.mrb[0].mxu1 %vm111_vm2, %v101_v25 }
 0x1b6   :  { %v181_v27 = vpop.f32.mrb[0].mxu1 }
 0x1b7   :  { %v182_v28 = vadd.f32 %v181_v27, %v110_v26  ;;  %v246_v29 = vpop.f32.mrb[1].mxu1 }
 0x1b9   :  { %186 = vst.msk [vmem:[#allocation2] sm:$0x1] %vm185_vm3, %v182_v28 }
 0x1ba   :  { %280 = shalt.err (!%p277_p4)
}
 0x1bb   :  { %s281_s4 = scalar_lea.hbm %s389_s5, 16 }
 0x1bc   :  { %p282_p5 = scmp.ne.s32.totalorder %s389_s5, %s281_s4  ;;  %p285_p6 = scmp.lt.u32.totalorder %s281_s4, %s389_s5 }
 0x1be   :  { %p287_p7 = pnand %p285_p6, %p282_p5 }
 0x1c0   :  { %290 = shalt.err (!%p287_p7)
}
 0x1c1   :  { %196 = dma.vmem_to_hbm [thread:$0]  %s194_s22, 16, %s389_s5, [#allocation3]  }
 0x1c2   :  { %291 = dma.done.wait [#allocation3], 16  }
 0x1c3   :  { %292 = vsyncadd [#allocation3], 4294967280 }
 0x1c4   :  { %200 = vsyncpa [#allocation3], 1 }

</bundles_post_ra>
